<compile_context>
chip_gen: v7x
topology: tpu7x:2x2x1
jax: 0.10.0
libtpu: 0.0.40
codegen_flags: <defaults>
</compile_context>

<pallas_src>
import jax
import jax.numpy as jnp
from jax.experimental import pallas as pl
from jax.experimental.pallas import tpu as pltpu

D_IN, D_H1, D_H2, D_OUT = 50, 50, 100, 1


def mlp_kernel(x_ref, w1_ref, b1_ref, w2_ref, b2_ref, w3_ref,
               alpha_ref, b3_ref, o_ref):
    xT = x_ref[...]                                               # (50, TB) bf16

    # fc1 + ReLU:  a1^T = W1^T @ x^T   (bf16 MXU matmul, f32 accumulation)
    a1 = jnp.dot(w1_ref[...], xT, preferred_element_type=jnp.float32) + b1_ref[...]
    h1 = jnp.maximum(a1, 0.0)                                     # (50, TB) f32

    # dropout(0.2): identity at inference time.

    # fc2 + PReLU(1):  a2^T = W2^T @ h1^T ; alpha scalar read from SMEM
    a2 = jnp.dot(w2_ref[...], h1.astype(jnp.bfloat16),
                 preferred_element_type=jnp.float32) + b2_ref[...]
    alpha = alpha_ref[0, 0]
    h2 = jnp.where(a2 > 0, a2, alpha * a2)                        # (100, TB) f32

    # out + Sigmoid:  a3^T = W3^T @ h2^T  -> lane-dense (1, TB)
    a3 = jnp.dot(w3_ref[...], h2.astype(jnp.bfloat16),
                 preferred_element_type=jnp.float32) + b3_ref[0, 0]
    o_ref[...] = jax.nn.sigmoid(a3)


def _round_up(v, m):
    return ((v + m - 1) // m) * m


def _choose_tb(B, tb_max):
    """Lane-dense batch tile: multiple of 128, big (amortize per-step overhead),
    but aiming for >= ~8 grid steps at large B (v7x: 2 TCs x double-buffering)."""
    tb_max = max(128, (tb_max // 128) * 128)
    tb = min(tb_max, _round_up((B + 7) // 8, 128))
    if tb >= B:
        return B           # single exact block, no OOB tail
    return tb


def net_forward(x, params, *, tb=8192):
    """Forward pass of Net. x: (B, 50) f32. Returns (B, 1) f32."""
    w1, b1, w2, b2, alpha, w3, b3 = params
    B = x.shape[0]

    # Single fused wrapper pass: transpose + bf16 cast (batch onto the lane axis).
    # No jnp.pad — ragged tail handled by the non-divisible final block.
    xT = x.T.astype(jnp.bfloat16)                 # (50, B)
    w1T = w1.T.astype(jnp.bfloat16)               # (50, 50)
    b1T = b1.reshape(D_H1, 1)                     # (50, 1)  f32
    w2T = w2.T.astype(jnp.bfloat16)               # (100, 50)
    b2T = b2.reshape(D_H2, 1)                     # (100, 1) f32
    w3T = w3.T.astype(jnp.bfloat16)               # (1, 100)
    alpha_s = alpha.reshape(1, 1)                 # SMEM scalar
    b3_s = b3.reshape(1, 1)                       # SMEM scalar

    TB = _choose_tb(B, tb)
    grid = (pl.cdiv(B, TB),)

    def const(shape):
        # Block pinned to (0, 0): no re-DMA across grid steps -> VMEM-resident params.
        # (pipeline_mode=pl.Buffered(1) would also drop the double-buffer bookkeeping.)
        return pl.BlockSpec(shape, lambda i: (0, 0))

    yT = pl.pallas_call(
        mlp_kernel,
        out_shape=jax.ShapeDtypeStruct((D_OUT, B), jnp.float32),
        grid=grid,
        in_specs=[
            pl.BlockSpec((D_IN, TB), lambda i: (0, i)),          # x^T, batch on lanes
            const((D_H1, D_IN)),                                 # W1^T (resident)
            const((D_H1, 1)),                                    # b1^T
            const((D_H2, D_H1)),                                 # W2^T
            const((D_H2, 1)),                                    # b2^T
            const((D_OUT, D_H2)),                                # W3^T
            pl.BlockSpec(memory_space=pltpu.MemorySpace.SMEM),   # PReLU alpha
            pl.BlockSpec(memory_space=pltpu.MemorySpace.SMEM),   # b3
        ],
        out_specs=pl.BlockSpec((D_OUT, TB), lambda i: (0, i)),   # lane-dense (1, TB)
        compiler_params=pltpu.CompilerParams(
            dimension_semantics=("parallel",),                   # v7x: split batch over 2 TCs
            vmem_limit_bytes=32 * 1024 * 1024),
    )(xT, w1T, b1T, w2T, b2T, w3T, alpha_s, b3_s)

    # (1, B) -> (B, 1); tiny reshape, no data reordering.
    return yT.reshape(B, D_OUT)


def net_reference(x, params):
    """Plain-JAX reference mimicking the kernel's bf16-stream / f32-accum math."""
    w1, b1, w2, b2, alpha, w3, b3 = params
    cast = lambda a: a.astype(jnp.bfloat16).astype(jnp.float32)
    h1 = jnp.maximum(cast(x) @ cast(w1) + b1, 0.0)
    a2 = cast(h1) @ cast(w2) + b2
    h2 = jnp.where(a2 > 0, a2, alpha.reshape(()) * a2)
    return jax.nn.sigmoid(cast(h2) @ cast(w3) + b3)


def init_params(key):
    """Deterministic parameter init (shapes from Net.__init__)."""
    ks = jax.random.split(key, 6)
    w1 = jax.random.normal(ks[0], (D_IN, D_H1), jnp.float32) * 0.1
    b1 = jax.random.normal(ks[1], (1, D_H1), jnp.float32) * 0.01
    w2 = jax.random.normal(ks[2], (D_H1, D_H2), jnp.float32) * 0.1
    b2 = jax.random.normal(ks[3], (1, D_H2), jnp.float32) * 0.01
    alpha = jnp.full((1, 1), 0.25, jnp.float32)  # PyTorch PReLU(1) default init
    w3 = jax.random.normal(ks[4], (D_H2, D_OUT), jnp.float32) * 0.1
    b3 = jax.random.normal(ks[5], (1, D_OUT), jnp.float32) * 0.01
    return (w1, b1, w2, b2, alpha, w3, b3)


if __name__ == "__main__":
    key = jax.random.PRNGKey(0)
    pkey, xkey = jax.random.split(key)
    params = init_params(pkey)

    # Small batch consistent with the module's forward: (B, 50).
    B = 8
    x = jax.random.normal(xkey, (B, D_IN), jnp.float32)
    y = jax.block_until_ready(net_forward(x, params))
    assert y.shape == (B, D_OUT)
    assert bool(jnp.all((y >= 0.0) & (y <= 1.0)))
    ref = net_reference(x, params)
    assert jnp.allclose(y, ref, atol=5e-3), "mismatch vs reference (B=8)"

    # Multi-step grid + ragged final block (no wrapper-side pad).
    B2 = 300
    x2 = jax.random.normal(jax.random.PRNGKey(1), (B2, D_IN), jnp.float32)
    y2 = jax.block_until_ready(net_forward(x2, params))
    assert y2.shape == (B2, D_OUT)
    ref2 = net_reference(x2, params)
    assert jnp.allclose(y2, ref2, atol=5e-3), "mismatch vs reference (B=300)"

    # Larger batch: exercises the >=8-grid-steps tile selection with bigger TB.
    B3 = 2048
    x3 = jax.random.normal(jax.random.PRNGKey(2), (B3, D_IN), jnp.float32)
    y3 = jax.block_until_ready(net_forward(x3, params))
    assert y3.shape == (B3, D_OUT)
    ref3 = net_reference(x3, params)
    assert jnp.allclose(y3, ref3, atol=5e-3), "mismatch vs reference (B=2048)"

    print("KERNEL_OK")
</pallas_src>

<mosaic_0001>
module attributes {stable_mosaic.version = 11 : i64} {
  func.func @mlp_kernel(%arg0: i32, %arg1: memref<50x8xbf16, #tpu.memory_space<vmem>>, %arg2: memref<50x50xbf16, #tpu.memory_space<vmem>>, %arg3: memref<50x1xf32, #tpu.memory_space<vmem>>, %arg4: memref<100x50xbf16, #tpu.memory_space<vmem>>, %arg5: memref<100x1xf32, #tpu.memory_space<vmem>>, %arg6: memref<1x100xbf16, #tpu.memory_space<vmem>>, %arg7: memref<1x1xf32, #tpu.memory_space<smem>>, %arg8: memref<1x1xf32, #tpu.memory_space<smem>>, %arg9: memref<1x8xf32, #tpu.memory_space<vmem>>) attributes {dimension_semantics = [#tpu.dimension_semantics<parallel>], iteration_bounds = array<i64: 1>, scalar_prefetch = 0 : i64, scratch_operands = 0 : i64, tpu.core_type = #tpu.core_type<tc>, window_params = [{transform_indices = @transform_0, window_bounds = array<i64: 50, 8>}, {pipeline_mode = #tpu.pipeline_mode<synchronous>, transform_indices = @transform_1, window_bounds = array<i64: 50, 50>}, {pipeline_mode = #tpu.pipeline_mode<synchronous>, transform_indices = @transform_2, window_bounds = array<i64: 50, 1>}, {pipeline_mode = #tpu.pipeline_mode<synchronous>, transform_indices = @transform_3, window_bounds = array<i64: 100, 50>}, {pipeline_mode = #tpu.pipeline_mode<synchronous>, transform_indices = @transform_4, window_bounds = array<i64: 100, 1>}, {pipeline_mode = #tpu.pipeline_mode<synchronous>, transform_indices = @transform_5, window_bounds = array<i64: 1, 100>}, {transform_indices = @transform_6, window_bounds = array<i64: 1, 1>}, {transform_indices = @transform_7, window_bounds = array<i64: 1, 1>}, {transform_indices = @transform_8, window_bounds = array<i64: 1, 8>}]} {
    %c0 = arith.constant 0 : index
    %c0_0 = arith.constant 0 : index
    %0 = vector.load %arg1[%c0, %c0_0] : memref<50x8xbf16, #tpu.memory_space<vmem>>, vector<50x8xbf16>
    %c0_1 = arith.constant 0 : index
    %c0_2 = arith.constant 0 : index
    %1 = vector.load %arg2[%c0_1, %c0_2] : memref<50x50xbf16, #tpu.memory_space<vmem>>, vector<50x50xbf16>
    %cst = arith.constant dense<0.000000e+00> : vector<50x8xf32>
    %2 = tpu.matmul %1, %0, %cst {dimension_numbers = #tpu.dot_dimension_numbers<[1], [0], [0], [1], [0, 0, 1, 1], [], []>} : vector<50x50xbf16>, vector<50x8xbf16>, vector<50x8xf32> -> vector<50x8xf32>
    %c0_3 = arith.constant 0 : index
    %c0_4 = arith.constant 0 : index
    %3 = vector.load %arg3[%c0_3, %c0_4] : memref<50x1xf32, #tpu.memory_space<vmem>>, vector<50x1xf32>
    %4 = vector.broadcast %3 : vector<50x1xf32> to vector<50x8xf32>
    %5 = arith.addf %2, %4 : vector<50x8xf32>
    %cst_5 = arith.constant 0.000000e+00 : f32
    %6 = vector.broadcast %cst_5 : f32 to vector<50x8xf32>
    %7 = arith.maximumf %5, %6 : vector<50x8xf32>
    %c0_6 = arith.constant 0 : index
    %c0_7 = arith.constant 0 : index
    %8 = vector.load %arg4[%c0_6, %c0_7] : memref<100x50xbf16, #tpu.memory_space<vmem>>, vector<100x50xbf16>
    %9 = arith.truncf %7 : vector<50x8xf32> to vector<50x8xbf16>
    %cst_8 = arith.constant dense<0.000000e+00> : vector<100x8xf32>
    %10 = tpu.matmul %8, %9, %cst_8 {dimension_numbers = #tpu.dot_dimension_numbers<[1], [0], [0], [1], [0, 0, 1, 1], [], []>} : vector<100x50xbf16>, vector<50x8xbf16>, vector<100x8xf32> -> vector<100x8xf32>
    %c0_9 = arith.constant 0 : index
    %c0_10 = arith.constant 0 : index
    %11 = vector.load %arg5[%c0_9, %c0_10] : memref<100x1xf32, #tpu.memory_space<vmem>>, vector<100x1xf32>
    %12 = vector.broadcast %11 : vector<100x1xf32> to vector<100x8xf32>
    %13 = arith.addf %10, %12 : vector<100x8xf32>
    %c0_11 = arith.constant 0 : index
    %c0_12 = arith.constant 0 : index
    %14 = memref.load %arg7[%c0_11, %c0_12] : memref<1x1xf32, #tpu.memory_space<smem>>
    %cst_13 = arith.constant 0.000000e+00 : f32
    %15 = vector.broadcast %cst_13 : f32 to vector<100x8xf32>
    %16 = arith.cmpf ogt, %13, %15 : vector<100x8xf32>
    %17 = vector.broadcast %14 : f32 to vector<100x8xf32>
    %18 = arith.mulf %17, %13 : vector<100x8xf32>
    %19 = arith.select %16, %13, %18 : vector<100x8xi1>, vector<100x8xf32>
    %c0_14 = arith.constant 0 : index
    %c0_15 = arith.constant 0 : index
    %20 = vector.load %arg6[%c0_14, %c0_15] : memref<1x100xbf16, #tpu.memory_space<vmem>>, vector<1x100xbf16>
    %21 = arith.truncf %19 : vector<100x8xf32> to vector<100x8xbf16>
    %cst_16 = arith.constant dense<0.000000e+00> : vector<1x8xf32>
    %22 = tpu.matmul %20, %21, %cst_16 {dimension_numbers = #tpu.dot_dimension_numbers<[1], [0], [0], [1], [0, 0, 1, 1], [], []>} : vector<1x100xbf16>, vector<100x8xbf16>, vector<1x8xf32> -> vector<1x8xf32>
    %c0_17 = arith.constant 0 : index
    %c0_18 = arith.constant 0 : index
    %23 = memref.load %arg8[%c0_17, %c0_18] : memref<1x1xf32, #tpu.memory_space<smem>>
    %24 = vector.broadcast %23 : f32 to vector<1x8xf32>
    %25 = arith.addf %22, %24 : vector<1x8xf32>
    %26 = arith.negf %25 : vector<1x8xf32>
    %27 = math.exp %26 : vector<1x8xf32>
    %cst_19 = arith.constant 1.000000e+00 : f32
    %28 = vector.broadcast %cst_19 : f32 to vector<1x8xf32>
    %29 = arith.addf %28, %27 : vector<1x8xf32>
    %30 = arith.divf %28, %29 : vector<1x8xf32>
    %c0_20 = arith.constant 0 : index
    %c0_21 = arith.constant 0 : index
    %31 = vector.load %arg9[%c0_20, %c0_21] : memref<1x8xf32, #tpu.memory_space<vmem>>, vector<1x8xf32>
    tpu.vector_store %arg9[%c0_20, %c0_21], %30 {strides = array<i32>} : memref<1x8xf32, #tpu.memory_space<vmem>>, vector<1x8xf32>,
    return
  }
  func.func @transform_0(%arg0: i32) -> (i32, i32) {
    %c0_i32 = arith.constant 0 : i32
    %c0_i32_0 = arith.constant 0 : i32
    return %c0_i32, %arg0 : i32, i32
  }
  func.func @transform_1(%arg0: i32) -> (i32, i32) {
    %c0_i32 = arith.constant 0 : i32
    %c0_i32_0 = arith.constant 0 : i32
    %c0_i32_1 = arith.constant 0 : i32
    return %c0_i32, %c0_i32_0 : i32, i32
  }
  func.func @transform_2(%arg0: i32) -> (i32, i32) {
    %c0_i32 = arith.constant 0 : i32
    %c0_i32_0 = arith.constant 0 : i32
    %c0_i32_1 = arith.constant 0 : i32
    return %c0_i32, %c0_i32_0 : i32, i32
  }
  func.func @transform_3(%arg0: i32) -> (i32, i32) {
    %c0_i32 = arith.constant 0 : i32
    %c0_i32_0 = arith.constant 0 : i32
    %c0_i32_1 = arith.constant 0 : i32
    return %c0_i32, %c0_i32_0 : i32, i32
  }
  func.func @transform_4(%arg0: i32) -> (i32, i32) {
    %c0_i32 = arith.constant 0 : i32
    %c0_i32_0 = arith.constant 0 : i32
    %c0_i32_1 = arith.constant 0 : i32
    return %c0_i32, %c0_i32_0 : i32, i32
  }
  func.func @transform_5(%arg0: i32) -> (i32, i32) {
    %c0_i32 = arith.constant 0 : i32
    %c0_i32_0 = arith.constant 0 : i32
    %c0_i32_1 = arith.constant 0 : i32
    return %c0_i32, %c0_i32_0 : i32, i32
  }
  func.func @transform_6(%arg0: i32) -> (i32, i32) {
    %c0_i32 = arith.constant 0 : i32
    %c0_i32_0 = arith.constant 0 : i32
    %c0_i32_1 = arith.constant 0 : i32
    return %c0_i32, %c0_i32_0 : i32, i32
  }
  func.func @transform_7(%arg0: i32) -> (i32, i32) {
    %c0_i32 = arith.constant 0 : i32
    %c0_i32_0 = arith.constant 0 : i32
    %c0_i32_1 = arith.constant 0 : i32
    return %c0_i32, %c0_i32_0 : i32, i32
  }
  func.func @transform_8(%arg0: i32) -> (i32, i32) {
    %c0_i32 = arith.constant 0 : i32
    %c0_i32_0 = arith.constant 0 : i32
    return %c0_i32, %arg0 : i32, i32
  }
}

</mosaic_0001>

<bundles_post_ra>
// kernel: tpu_custom_call.1
= control target key start
LH: loop header
LB: loop body
LE: loop exit
PB: predicated region body
PF: predicated region fallthrough
CT: control target
= control target key end

     0   :  { %vm128_vm0 = vcmask 408576   ;;  %v752_v4 = vmov 0   ;;  %vm141_vm1 = vcmask 1040384   ;;  %s983_s0 = inlined_call_operand.vmem [shape: bf16[50,8], index: 0, kind: input, shape index: {}]   ;;  %s984_s1 = inlined_call_operand.vmem [shape: bf16[50,50], index: 1, kind: input, shape index: {}]   ;;  %s985_s2 = inlined_call_operand.vmem [shape: f32[50,1], index: 2, kind: input, shape index: {}]   ;;  %s986_s3 = inlined_call_operand.vmem [shape: bf16[100,50], index: 3, kind: input, shape index: {}]   ;;  %s987_s4 = inlined_call_operand.vmem [shape: f32[100,1], index: 4, kind: input, shape index: {}]   ;;  %s988_s5 = inlined_call_operand.vmem [shape: bf16[1,100], index: 5, kind: input, shape index: {}]   ;;  %s989_s6 = inlined_call_operand.<no memory space> [shape: f32[1,1], index: 6, kind: input, shape index: {}]   ;;  %s990_s7 = inlined_call_operand.<no memory space> [shape: f32[1,1], index: 7, kind: input, shape index: {}]   ;;  %s991_s8 = inlined_call_operand.hbm [shape: f32[1,8], index: 8, kind: output, shape index: {}]  }
   0x1   :  { %v709_v0 = vld [vmem:[%s983_s0] sm:$0xff]   ;;  %v710_v1 = vld [vmem:[%s983_s0 + $0x8] sm:$0xff]   ;;  %v711_v2 = vld [vmem:[%s983_s0 + $0x10] sm:$0xff]   ;;  %707 = vset.pattern.permute.xlu0 %v752_v4  ;;  %708 = vset.pattern.permute.xlu1 %v752_v4 }
   0x2   :  { %632 = vmatprep.subr.bf16.mxu0 %v709_v0  ;;  %v713_v3 = vld [vmem:[%s984_s1] sm:$0xff]   ;;  %v49_v6 = vld [vmem:[%s985_s2 + $0x10] sm:$0xff]  ;;  %v712_v7 = vld [vmem:[%s983_s0 + $0x18] ss:$0 sps:$4 sm:$0x11]  }
   0x3   :  { %633 = vmatpush3.bf16.msra.mxu0 %v709_v0  ;;  %640 = vmatprep.mubr.msk.bf16.mxu0 %vm128_vm0, %v713_v3  ;;  %v47_v5 = vld [vmem:[%s985_s2] sm:$0xff]  ;;  %v48_v8 = vld [vmem:[%s985_s2 + $0x8] sm:$0xff]  ;;  %v50_v9 = vld [vmem:[%s985_s2 + $0x18] sm:$0xff]  ;;  %v143_v10 = vsel %vm141_vm1, %v712_v7, 0 }
   0x4   :  { %634 = vmatprep.subr.bf16.mxu0 %v710_v1  ;;  %56 = vperm.xlu0 %707, %v47_v5   ;;  %v714_v11 = vld [vmem:[%s984_s1 + $0x8] sm:$0xff]   ;;  %v715_v12 = vld [vmem:[%s984_s1 + $0x10] sm:$0xff]   ;;  %v51_v13 = vld [vmem:[%s985_s2 + $0x20] sm:$0xff] }
   0x5   :  { %66 = vperm.xlu1 %708, %v49_v6   ;;  %v52_v14 = vld [vmem:[%s985_s2 + $0x28] sm:$0xff]  ;;  %v53_v15 = vld [vmem:[%s985_s2 + $0x30] sm:$0x3]  ;;  %v233_v16 = vld [vmem:[%s987_s4] sm:$0xff] }
   0x7   :  { %635 = vmatpush3.bf16.msra.mxu0 %v710_v1 }
   0x8   :  { %636 = vmatprep.subr.bf16.mxu0 %v711_v2  ;;  %61 = vperm.xlu0 %707, %v48_v8  }
   0x9   :  { %71 = vperm.xlu1 %708, %v50_v9  }
   0xb   :  { %637 = vmatpush3.bf16.msra.mxu0 %v711_v2 }
   0xc   :  { %702 = vmatprep.subr.msk.bf16.mxu0 %vm141_vm1, %v712_v7  ;;  %76 = vperm.xlu0 %707, %v51_v13  }
   0xd   :  { %81 = vperm.xlu1 %708, %v52_v14  }
   0xf   :  { %639 = vmatpush3.bf16.msra.mxu0 %v143_v10 }
  0x12   :  { %641 = vmatmul.mubr.msk.bf16.vlgmr.msra.gmra.mrb[0].mxu0 %vm128_vm0, %v714_v11 }
  0x13   :  { %15 = vsyncpa [#allocation5], 0  ;;  %644 = vmatprep.mubr.msk.bf16.mxu0 %vm128_vm0, %v715_v12  ;;  %86 = vperm.xlu0 %707, %v53_v15   ;;  %v234_v17 = vld [vmem:[%s987_s4 + $0x8] sm:$0xff]  ;;  %v716_v18 = vld [vmem:[%s984_s1 + $0x18] ss:$0 sps:$4 sm:$0x11]   ;;  %v944_v10 = vstv %s989_s6 }
  0x14   :  { %248 = vperm.xlu1 %708, %v233_v16   ;;  %v235_v19 = vld [vmem:[%s987_s4 + $0x10] sm:$0xff]  ;;  %v236_v20 = vld [vmem:[%s987_s4 + $0x18] sm:$0xff]  ;;  %v237_v21 = vld [vmem:[%s987_s4 + $0x20] sm:$0xff]  ;;  %v753_v30 = vmov 0.0   ;;  %vm754_vm2 = vmmov 0   ;;  %s755_s27 = smov [#allocation4]  }
  0x15   :  { %v238_v22 = vld [vmem:[%s987_s4 + $0x28] sm:$0xff]  ;;  %v239_v23 = vld [vmem:[%s987_s4 + $0x30] sm:$0xff]  ;;  %v240_v24 = vld [vmem:[%s987_s4 + $0x38] sm:$0xff]  ;;  %648 = vmatprep.subr.bf16.mxu1 %v753_v30  ;;  %684 = vmatprep.subr.bf16.mxu0 %v753_v30  ;;  %s569_s28 = sshll.u32 %s755_s27, 4  ;;  %s570_s28 = int_to_ptr.vmem [resolvable:$true] %s569_s28 }
  0x16   :  { %v241_v25 = vld [vmem:[%s987_s4 + $0x40] sm:$0xff]  ;;  %v242_v26 = vld [vmem:[%s987_s4 + $0x48] sm:$0xff]  ;;  %v243_v27 = vld [vmem:[%s987_s4 + $0x50] sm:$0xff]  ;;  %656 = vmatprep.mubr.msk.bf16.mxu1 %vm754_vm2, %v753_v30  ;;  %s732_s29 = scalar_lea.vmem %s570_s28, 32  ;;  %p733_p1 = scmp.lt.s32.totalorder %s570_s28, %s570_s28 }
  0x17   :  { %253 = vperm.xlu0 %707, %v234_v17   ;;  %v244_v28 = vld [vmem:[%s987_s4 + $0x58] sm:$0xff]  ;;  %v245_v29 = vld [vmem:[%s987_s4 + $0x60] sm:$0xf]  ;;  %v718_v2 = vld [vmem:[%s986_s3 + $0x8] sm:$0xff]  }
  0x18   :  { %258 = vperm.xlu1 %708, %v235_v19   ;;  %v717_v1 = vld [vmem:[%s986_s3] sm:$0xff]   ;;  %v719_v3 = vld [vmem:[%s986_s3 + $0x10] sm:$0xff]   ;;  %v720_v4 = vld [vmem:[%s986_s3 + $0x18] sm:$0xff]  }
  0x19   :  { %v721_v5 = vld [vmem:[%s986_s3 + $0x20] sm:$0xff]   ;;  %v722_v6 = vld [vmem:[%s986_s3 + $0x28] sm:$0xff]   ;;  %v723_v7 = vld [vmem:[%s986_s3 + $0x30] ss:$0 sps:$4 sm:$0x33]  }
  0x1a   :  { %645 = vmatmul.mubr.msk.bf16.gmra.mrb[4].mxu0 %vm128_vm0, %v716_v18 }
  0x1b   :  { %263 = vperm.xlu0 %707, %v236_v20   ;;  %698 = vmatprep.mubr.msk.bf16.mxu0 %vm754_vm2, %v753_v30 }
  0x1c   :  { %268 = vperm.xlu1 %708, %v237_v21  }
  0x1f   :  { %273 = vperm.xlu0 %707, %v238_v22  }
  0x20   :  { %278 = vperm.xlu1 %708, %v239_v23  }
  0x23   :  { %283 = vperm.xlu0 %707, %v240_v24  }
  0x24   :  { %288 = vperm.xlu1 %708, %v241_v25  }
  0x27   :  { %293 = vperm.xlu0 %707, %v242_v26  }
  0x28   :  { %298 = vperm.xlu1 %708, %v243_v27  }
  0x2b   :  { %303 = vperm.xlu0 %707, %v244_v28  }
  0x2c   :  { %308 = vperm.xlu1 %708, %v245_v29  }
  0x83   :  { %v57_v31 = vpop.permute.xlu0 %56 }
  0x84   :  { %v67_v32 = vpop.permute.xlu1 %66 }
  0x87   :  { %v62_v33 = vpop.permute.xlu0 %61 }
  0x88   :  { %v72_v35 = vpop.permute.xlu1 %71 }
  0x8b   :  { %v77_v38 = vpop.permute.xlu0 %76 }
  0x8c   :  { %v82_v56 = vpop.permute.xlu1 %81 }
  0x92   :  { %v87_v49 = vpop.permute.xlu0 %86 }
  0x93   :  { %v249_v8 = vpop.permute.xlu1 %248 }
  0x96   :  { %v254_v13 = vpop.permute.xlu0 %253 }
  0x97   :  { %v259_v21 = vpop.permute.xlu1 %258 }
  0x9a   :  { %v264_v26 = vpop.permute.xlu0 %263 }
  0xe5   :  { %v642_v34 = vpop.f32.mrb[0].mxu0 }
  0xe6   :  { %v188_v36 = vadd.f32 %v642_v34, %v67_v32  ;;  %v179_v37 = vpop.f32.mrb[1].mxu0 }
  0xe7   :  { %v180_v39 = vadd.f32 %v179_v37, %v57_v31  ;;  %v643_v40 = vpop.f32.mrb[2].mxu0 }
  0xe8   :  { %v191_v41 = vadd.f32 %v643_v40, %v72_v35  ;;  %v182_v42 = vpop.f32.mrb[3].mxu0  ;;  %v211_v44 = vmax.f32 %v188_v36, 0.0  ;;  %v269_v35 = vpop.permute.xlu1 %268 }
  0xe9   :  { %v183_v43 = vadd.f32 %v182_v42, %v62_v33  ;;  %v209_v46 = vmax.f32 %v180_v39, 0.0  ;;  %v274_v40 = vpop.permute.xlu0 %273 }
  0xea   :  { %v212_v45 = vmax.f32 %v191_v41, 0.0 }
  0xeb   :  { %v210_v47 = vmax.f32 %v183_v43, 0.0 }
  0xec   :  { %v230_v48 = vpack.c.bf16 %v212_v45, %v211_v44 }
  0xed   :  { %v646_v50 = vpop.f32.mrb[4].mxu0  ;;  %v229_v51 = vpack.c.bf16 %v210_v47, %v209_v46 }
  0xee   :  { %v204_v52 = vadd.f32 %v646_v50, %v87_v49  ;;  %v195_v53 = vpop.f32.mrb[5].mxu0 }
  0xef   :  { %v196_v54 = vadd.f32 %v195_v53, %v77_v38  ;;  %v647_v55 = vpop.f32.mrb[6].mxu0  ;;  %649 = vmatpush3.bf16.msra.mxu1 %v229_v51  ;;  %v284_v53 = vpop.permute.xlu0 %283 }
  0xf0   :  { %v198_v57 = vpop.f32.mrb[7].mxu0  ;;  %650 = vmatprep.subr.bf16.mxu1 %v753_v30  ;;  %v215_v59 = vmax.f32 %v204_v52, 0.0 }
  0xf1   :  { %v199_v58 = vadd.f32 %v198_v57, %v82_v56  ;;  %v213_v60 = vmax.f32 %v196_v54, 0.0 }
  0xf2   :  { %v232_v63 = vpack.c.bf16 %v215_v59, %v215_v59 }
  0xf3   :  { %v214_v61 = vmax.f32 %v199_v58, 0.0  ;;  %651 = vmatpush3.bf16.msra.mxu1 %v230_v48  ;;  %v279_v48 = vpop.permute.xlu1 %278 }
  0xf4   :  { %652 = vmatprep.subr.bf16.mxu1 %v753_v30  ;;  %v366_v0 = vsel %vm141_vm1, %v232_v63, 0  ;;  %vm507_vm1 = vcmask 818176  }
  0xf5   :  { %v231_v62 = vpack.c.bf16 %v214_v61, %v213_v60 }
  0xf7   :  { %653 = vmatpush3.bf16.msra.mxu1 %v231_v62  ;;  %v289_v61 = vpop.permute.xlu1 %288 }
  0xf8   :  { %654 = vmatprep.subr.bf16.mxu1 %v753_v30 }
  0xfb   :  { %655 = vmatpush3.bf16.msra.mxu1 %v366_v0 }
  0xfe   :  { %657 = vmatmul.mubr.msk.bf16.vlgmr.msra.gmra.mrb[0].mxu1 %vm128_vm0, %v717_v1 }
  0xff   :  { %660 = vmatprep.mubr.msk.bf16.mxu1 %vm754_vm2, %v753_v30 }
 0x106   :  { %661 = vmatmul.mubr.msk.bf16.gmra.mrb[4].mxu1 %vm128_vm0, %v718_v2  ;;  %v294_v2 = vpop.permute.xlu0 %293 }
 0x107   :  { %664 = vmatprep.mubr.msk.bf16.mxu1 %vm754_vm2, %v753_v30 }
 0x10e   :  { %665 = vmatmul.mubr.msk.bf16.gmra.mrb[8].mxu1 %vm128_vm0, %v719_v3 }
 0x10f   :  { %668 = vmatprep.mubr.msk.bf16.mxu1 %vm754_vm2, %v753_v30 }
 0x116   :  { %669 = vmatmul.mubr.msk.bf16.gmra.mrb[12].mxu1 %vm128_vm0, %v720_v4 }
 0x117   :  { %672 = vmatprep.mubr.msk.bf16.mxu1 %vm754_vm2, %v753_v30 }
 0x11e   :  { %673 = vmatmul.mubr.msk.bf16.gmra.mrb[16].mxu1 %vm128_vm0, %v721_v5 }
 0x11f   :  { %676 = vmatprep.mubr.msk.bf16.mxu1 %vm754_vm2, %v753_v30 }
 0x126   :  { %677 = vmatmul.mubr.msk.bf16.gmra.mrb[20].mxu1 %vm128_vm0, %v722_v6 }
 0x127   :  { %680 = vmatprep.mubr.msk.bf16.mxu1 %vm754_vm2, %v753_v30  ;;  %vm561_vm2 = vcmask 57344  }
 0x12e   :  { %681 = vmatmul.mubr.msk.bf16.gmra.mrb[24].mxu1 %vm128_vm0, %v723_v7  ;;  %vm511_vm0 = vcmask 1041408  }
 0x1d1   :  { %v402_v9 = vpop.f32.mrb[0].mxu1 }
 0x1d2   :  { %v403_v11 = vadd.f32 %v402_v9, %v249_v8  ;;  %v658_v12 = vpop.f32.mrb[1].mxu1 }
 0x1d3   :  { %v405_v14 = vpop.f32.mrb[2].mxu1 }
 0x1d4   :  { %v471_v15 = vmul.f32 %v944_v10, %v403_v11  ;;  %v406_v16 = vadd.f32 %v405_v14, %v254_v13  ;;  %v659_v17 = vpop.f32.mrb[3].mxu1  ;;  %vm457_vm3 = vcmp.gt.f32.partialorder %v403_v11, 0.0 }
 0x1d6   :  { %vm458_vm4 = vcmp.gt.f32.partialorder %v406_v16, 0.0  ;;  %v472_v18 = vmul.f32 %v944_v10, %v406_v16  ;;  %v484_v19 = vsel %vm457_vm3, %v403_v11, %v471_v15  ;;  %v299_v11 = vpop.permute.xlu1 %298 }
 0x1d8   :  { %v485_v20 = vsel %vm458_vm4, %v406_v16, %v472_v18  ;;  %v304_v16 = vpop.permute.xlu0 %303 }
 0x1d9   :  { %v498_v22 = vpack.c.bf16 %v485_v20, %v484_v19  ;;  %v410_v23 = vpop.f32.mrb[4].mxu1 }
 0x1da   :  { %v411_v24 = vadd.f32 %v410_v23, %v259_v21  ;;  %v662_v25 = vpop.f32.mrb[5].mxu1 }
 0x1db   :  { %v413_v27 = vpop.f32.mrb[6].mxu1  ;;  %685 = vmatpush3.bf16.msra.mxu0 %v498_v22 }
 0x1dc   :  { %v473_v28 = vmul.f32 %v944_v10, %v411_v24  ;;  %v414_v29 = vadd.f32 %v413_v27, %v264_v26  ;;  %v663_v31 = vpop.f32.mrb[7].mxu1  ;;  %686 = vmatprep.subr.bf16.mxu0 %v753_v30  ;;  %vm459_vm5 = vcmp.gt.f32.partialorder %v411_v24, 0.0 }
 0x1de   :  { %vm460_vm6 = vcmp.gt.f32.partialorder %v414_v29, 0.0  ;;  %v474_v32 = vmul.f32 %v944_v10, %v414_v29  ;;  %v486_v33 = vsel %vm459_vm5, %v411_v24, %v473_v28  ;;  %v309_v24 = vpop.permute.xlu1 %308 }
 0x1e0   :  { %v487_v34 = vsel %vm460_vm6, %v414_v29, %v474_v32 }
 0x1e1   :  { %v499_v36 = vpack.c.bf16 %v487_v34, %v486_v33  ;;  %v418_v37 = vpop.f32.mrb[8].mxu1 }
 0x1e2   :  { %v419_v38 = vadd.f32 %v418_v37, %v269_v35  ;;  %v666_v39 = vpop.f32.mrb[9].mxu1  ;;  %v506_v37 = vstv %s990_s7 }
 0x1e3   :  { %v421_v41 = vpop.f32.mrb[10].mxu1  ;;  %687 = vmatpush3.bf16.msra.mxu0 %v499_v36  ;;  %v497_v36 = vld [vmem:[%s988_s5] sm:$0x1]  ;;  %s728_s5 = scalar_lea.vmem %s570_s28, 16 }
 0x1e4   :  { %v475_v42 = vmul.f32 %v944_v10, %v419_v38  ;;  %v422_v43 = vadd.f32 %v421_v41, %v274_v40  ;;  %v667_v44 = vpop.f32.mrb[11].mxu1  ;;  %688 = vmatprep.subr.bf16.mxu0 %v753_v30  ;;  %vm461_vm7 = vcmp.gt.f32.partialorder %v419_v38, 0.0  ;;  %p729_p0 = scmp.ne.s32.totalorder %s570_s28, %s728_s5  ;;  %p734_p2 = scmp.lt.s32.totalorder %s732_s29, %s728_s5 }
 0x1e6   :  { %vm462_vm8 = vcmp.gt.f32.partialorder %v422_v43, 0.0  ;;  %v476_v45 = vmul.f32 %v944_v10, %v422_v43  ;;  %v488_v46 = vsel %vm461_vm7, %v419_v38, %v475_v42  ;;  %p735_p3 = por %p734_p2, %p733_p1 }
 0x1e8   :  { %v489_v47 = vsel %vm462_vm8, %v422_v43, %v476_v45  ;;  %p736_p4 = pnand %p735_p3, %p729_p0 }
 0x1e9   :  { %v500_v49 = vpack.c.bf16 %v489_v47, %v488_v46  ;;  %v426_v50 = vpop.f32.mrb[12].mxu1 }
 0x1ea   :  { %v427_v51 = vadd.f32 %v426_v50, %v279_v48  ;;  %v670_v52 = vpop.f32.mrb[13].mxu1 }
 0x1eb   :  { %v429_v54 = vpop.f32.mrb[14].mxu1  ;;  %689 = vmatpush3.bf16.msra.mxu0 %v500_v49 }
 0x1ec   :  { %v477_v55 = vmul.f32 %v944_v10, %v427_v51  ;;  %v430_v56 = vadd.f32 %v429_v54, %v284_v53  ;;  %v671_v57 = vpop.f32.mrb[15].mxu1  ;;  %690 = vmatprep.subr.bf16.mxu0 %v753_v30  ;;  %vm463_vm9 = vcmp.gt.f32.partialorder %v427_v51, 0.0 }
 0x1ee   :  { %vm464_vm10 = vcmp.gt.f32.partialorder %v430_v56, 0.0  ;;  %v478_v58 = vmul.f32 %v944_v10, %v430_v56  ;;  %v490_v59 = vsel %vm463_vm9, %v427_v51, %v477_v55 }
 0x1f0   :  { %v491_v60 = vsel %vm464_vm10, %v430_v56, %v478_v58 }
 0x1f1   :  { %v501_v62 = vpack.c.bf16 %v491_v60, %v490_v59  ;;  %v434_v63 = vpop.f32.mrb[16].mxu1 }
 0x1f2   :  { %v435_v0 = vadd.f32 %v434_v63, %v289_v61  ;;  %v674_v1 = vpop.f32.mrb[17].mxu1 }
 0x1f3   :  { %v437_v3 = vpop.f32.mrb[18].mxu1  ;;  %691 = vmatpush3.bf16.msra.mxu0 %v501_v62 }
 0x1f4   :  { %v479_v4 = vmul.f32 %v944_v10, %v435_v0  ;;  %v438_v5 = vadd.f32 %v437_v3, %v294_v2  ;;  %v675_v6 = vpop.f32.mrb[19].mxu1  ;;  %692 = vmatprep.subr.bf16.mxu0 %v753_v30  ;;  %vm465_vm11 = vcmp.gt.f32.partialorder %v435_v0, 0.0 }
 0x1f6   :  { %vm466_vm12 = vcmp.gt.f32.partialorder %v438_v5, 0.0  ;;  %v480_v7 = vmul.f32 %v944_v10, %v438_v5  ;;  %v492_v8 = vsel %vm465_vm11, %v435_v0, %v479_v4 }
 0x1f8   :  { %v493_v9 = vsel %vm466_vm12, %v438_v5, %v480_v7 }
 0x1f9   :  { %v502_v12 = vpack.c.bf16 %v493_v9, %v492_v8  ;;  %v442_v13 = vpop.f32.mrb[20].mxu1 }
 0x1fa   :  { %v443_v14 = vadd.f32 %v442_v13, %v299_v11  ;;  %v678_v15 = vpop.f32.mrb[21].mxu1 }
 0x1fb   :  { %v445_v17 = vpop.f32.mrb[22].mxu1  ;;  %693 = vmatpush3.bf16.msra.mxu0 %v502_v12 }
 0x1fc   :  { %v481_v18 = vmul.f32 %v944_v10, %v443_v14  ;;  %v446_v19 = vadd.f32 %v445_v17, %v304_v16  ;;  %v679_v20 = vpop.f32.mrb[23].mxu1  ;;  %694 = vmatprep.subr.bf16.mxu0 %v753_v30  ;;  %vm467_vm13 = vcmp.gt.f32.partialorder %v443_v14, 0.0 }
 0x1fe   :  { %vm468_vm14 = vcmp.gt.f32.partialorder %v446_v19, 0.0  ;;  %v482_v21 = vmul.f32 %v944_v10, %v446_v19  ;;  %v494_v22 = vsel %vm467_vm13, %v443_v14, %v481_v18 }
 0x200   :  { %v495_v23 = vsel %vm468_vm14, %v446_v19, %v482_v21 }
 0x201   :  { %v503_v25 = vpack.c.bf16 %v495_v23, %v494_v22  ;;  %v450_v26 = vpop.f32.mrb[24].mxu1 }
 0x202   :  { %v451_v27 = vadd.f32 %v450_v26, %v309_v24  ;;  %v682_v28 = vpop.f32.mrb[25].mxu1 }
 0x203   :  { %v453_v29 = vpop.f32.mrb[26].mxu1  ;;  %695 = vmatpush3.bf16.msra.mxu0 %v503_v25 }
 0x204   :  { %vm469_vm15 = vcmp.gt.f32.partialorder %v451_v27, 0.0  ;;  %v483_v31 = vmul.f32 %v944_v10, %v451_v27  ;;  %v683_v32 = vpop.f32.mrb[27].mxu1  ;;  %696 = vmatprep.subr.bf16.mxu0 %v753_v30 }
 0x206   :  { %v496_v33 = vsel %vm469_vm15, %v451_v27, %v483_v31 }
 0x207   :  { %v504_v34 = vpack.c.bf16 %v496_v33, %v496_v33 }
 0x209   :  { %v513_v35 = vsel %vm511_vm0, %v504_v34, 0 }
 0x20a   :  { %697 = vmatpush3.bf16.msra.mxu0 %v513_v35 }
 0x20d   :  { %699 = vmatmul.mubr.msk.bf16.vlgmr.msra.gmra.mrb[8].mxu0 %vm507_vm1, %v497_v36 }
 0x2e0   :  { %v549_v38 = vpop.f32.mrb[8].mxu0 }
 0x2e1   :  { %v550_v10 = vadd.f32 %v549_v38, %v506_v37  ;;  %v700_v39 = vpop.f32.mrb[9].mxu0 }
 0x2e2   :  { %v552_v40 = vpop.f32.mrb[10].mxu0 }
 0x2e3   :  { %v604_v30 = vmul.f32 -1.442695, %v550_v10  ;;  %v701_v41 = vpop.f32.mrb[11].mxu0 }
 0x2e5   :  { %724 = vpow2.f32 %v604_v30 }
 0x2ef   :  { %v725_v42 = vpop.eup %724 }
 0x2f0   :  { %v558_v43 = vadd.f32 1.0, %v725_v42 }
 0x2f2   :  { %726 = vrcp.f32 %v558_v43 }
 0x2fc   :  { %v727_v44 = vpop.eup %726 }
 0x2fd   :  { %562 = vst.msk [vmem:[#allocation4] sm:$0x1] %vm561_vm2, %v727_v44 }
 0x2fe   :  { %739 = shalt.err (!%p736_p4)
}
 0x2ff   :  { %s740_s9 = scalar_lea.hbm %s991_s8, 16 }
 0x300   :  { %p741_p5 = scmp.ne.s32.totalorder %s991_s8, %s740_s9  ;;  %p744_p6 = scmp.lt.u32.totalorder %s740_s9, %s991_s8 }
 0x302   :  { %p746_p7 = pnand %p744_p6, %p741_p5 }
 0x304   :  { %749 = shalt.err (!%p746_p7)
}
 0x305   :  { %572 = dma.vmem_to_hbm [thread:$0]  %s570_s28, 16, %s991_s8, [#allocation5]  }
 0x306   :  { %750 = dma.done.wait [#allocation5], 16  }
 0x307   :  { %751 = vsyncadd [#allocation5], 4294967280 }
 0x308   :  { %576 = vsyncpa [#allocation5], 1 }

</bundles_post_ra>
